<compile_context>
chip_gen: v6e
topology: v6e:2x2x1
jax: 0.10.0
libtpu: 0.0.40
codegen_flags: <defaults>
</compile_context>

<pallas_src>
import functools

import jax
import jax.numpy as jnp
from jax.experimental import pallas as pl
from jax.experimental.pallas import tpu as pltpu

A_PAD = 128  # lane-dense padded q_out width


def _round_up(x, m):
    return ((x + m - 1) // m) * m


def _layernorm(x, g, b, eps=1e-5):
    # LayerNorm over the last (feature/lane) axis, matching nn.LayerNorm.
    mu = jnp.mean(x, axis=-1, keepdims=True)
    xc = x - mu
    var = jnp.mean(xc * xc, axis=-1, keepdims=True)
    inv = jax.lax.rsqrt(var + eps)
    return xc * inv * g + b


# ----------------------------- Pallas kernel ------------------------------ #

def coma_q_mlp_kernel(e_ref, obs_ref, act_ref,
                      g_obs_ref, b_obs_ref, g_act_ref, b_act_ref,
                      w1o_ref, w1a_ref, b1_ref, ln1_g_ref, ln1_b_ref,
                      w2_ref, b2_ref, ln2_g_ref, ln2_b_ref,
                      wq_ref, bq_ref,
                      out_ref):
    """feature_norm -> [Linear, ReLU, LayerNorm] x2 -> q_out (lane-dense)."""
    f32 = jnp.float32
    bf16 = jnp.bfloat16

    # Replicate each batch observation row across its T agents with an exact
    # 0/1 selection matmul (no T-fold obs replication ever touches HBM).
    x_obs = jnp.dot(e_ref[...], obs_ref[...],
                    preferred_element_type=f32,
                    precision=jax.lax.Precision.HIGHEST)      # (TILE_N, obs_dim)
    x_act = act_ref[...]                                       # (TILE_N, T*A)

    # MLPBase.feature_norm: LayerNorm over the concatenated (obs ++ act)
    # features; statistics use the true (un-padded) feature count.
    d = x_obs.shape[-1] + x_act.shape[-1]
    mu = (jnp.sum(x_obs, axis=-1, keepdims=True)
          + jnp.sum(x_act, axis=-1, keepdims=True)) * (1.0 / d)
    co = x_obs - mu
    ca = x_act - mu
    var = (jnp.sum(co * co, axis=-1, keepdims=True)
           + jnp.sum(ca * ca, axis=-1, keepdims=True)) * (1.0 / d)
    inv = jax.lax.rsqrt(var + 1e-5)
    xo = co * inv * g_obs_ref[...] + b_obs_ref[...]
    xa = ca * inv * g_act_ref[...] + b_act_ref[...]

    # Block 1: Linear (split into obs/act halves) -> ReLU -> LayerNorm.
    h = (jnp.dot(xo.astype(bf16), w1o_ref[...], preferred_element_type=f32)
         + jnp.dot(xa.astype(bf16), w1a_ref[...], preferred_element_type=f32)
         + b1_ref[...])
    h = jnp.maximum(h, 0.0)
    h = _layernorm(h, ln1_g_ref[...], ln1_b_ref[...])

    # Block 2: Linear -> ReLU -> LayerNorm.
    h = jnp.dot(h.astype(bf16), w2_ref[...], preferred_element_type=f32) + b2_ref[...]
    h = jnp.maximum(h, 0.0)
    h = _layernorm(h, ln2_g_ref[...], ln2_b_ref[...])

    # q_out into a lane-dense (TILE_N, 128) block (padded columns are zero);
    # true action_dim lanes are sliced in the wrapper.
    q = jnp.dot(h.astype(bf16), wq_ref[...], preferred_element_type=f32) + bq_ref[...]
    out_ref[...] = q


# ------------------------------ pallas launch ------------------------------ #

def _run_coma_q_mlp(cent_obs, act_masked, params, *, num_agents, action_dim):
    """cent_obs: (B, obs_dim) f32, act_masked: (B*T, T*A) f32 -> q (B*T, A)."""
    f32 = jnp.float32
    bf16 = jnp.bfloat16
    B, obs_dim = cent_obs.shape
    T = num_agents
    TA = T * action_dim
    h1 = params["w1"].shape[1]
    h2 = params["w2"].shape[1]

    # Tile choice: TILE_B batch rows per step (multiple of 8), capped so the
    # per-step activation/output tiles stay well inside VMEM (v7x: 64 MiB).
    tile_b = min(256, _round_up(B, 8))
    while tile_b > 8 and tile_b * T * max(TA, A_PAD) * 4 > (2 << 20):
        tile_b //= 2
    tile_n = tile_b * T
    b_pad = _round_up(B, tile_b)
    n_pad = b_pad * T
    grid = (b_pad // tile_b,)

    obs_p = jnp.zeros((b_pad, obs_dim), f32).at[:B].set(cent_obs)
    act_p = jnp.zeros((n_pad, TA), f32).at[:B * T].set(act_masked)

    # Exact 0/1 expansion matrix: flat row r (within a tile) -> batch row r // T.
    expand = jax.nn.one_hot(jnp.arange(tile_n) // T, tile_b, dtype=f32)

    # Split feature_norm params / W1 along the (obs ++ act) feature axis,
    # store matmul weights as bf16, pad q_out weights/bias to 128 lanes.
    g_obs = params["ln0_g"][:, :obs_dim]
    b_obs = params["ln0_b"][:, :obs_dim]
    g_act = params["ln0_g"][:, obs_dim:]
    b_act = params["ln0_b"][:, obs_dim:]
    w1o = params["w1"][:obs_dim].astype(bf16)
    w1a = params["w1"][obs_dim:].astype(bf16)
    w2 = params["w2"].astype(bf16)
    wq = jnp.zeros((h2, A_PAD), f32).at[:, :action_dim].set(params["wq"]).astype(bf16)
    bq = jnp.zeros((1, A_PAD), f32).at[:, :action_dim].set(params["bq"])

    row = lambda i: (i, 0)   # row-tiled operands
    cst = lambda i: (0, 0)   # resident operands (fetched once)

    in_specs = [
        pl.BlockSpec((tile_n, tile_b), cst),         # expand
        pl.BlockSpec((tile_b, obs_dim), row),        # obs
        pl.BlockSpec((tile_n, TA), row),             # masked actions
        pl.BlockSpec((1, obs_dim), cst), pl.BlockSpec((1, obs_dim), cst),  # g_obs, b_obs
        pl.BlockSpec((1, TA), cst), pl.BlockSpec((1, TA), cst),            # g_act, b_act
        pl.BlockSpec((obs_dim, h1), cst), pl.BlockSpec((TA, h1), cst),     # w1o, w1a
        pl.BlockSpec((1, h1), cst), pl.BlockSpec((1, h1), cst), pl.BlockSpec((1, h1), cst),
        pl.BlockSpec((h1, h2), cst), pl.BlockSpec((1, h2), cst),
        pl.BlockSpec((1, h2), cst), pl.BlockSpec((1, h2), cst),
        pl.BlockSpec((h2, A_PAD), cst), pl.BlockSpec((1, A_PAD), cst),
    ]
    out_specs = pl.BlockSpec((tile_n, A_PAD), row)

    resident = (expand, g_obs, b_obs, g_act, b_act, w1o, w1a,
                params["b1"], params["ln1_g"], params["ln1_b"],
                w2, params["b2"], params["ln2_g"], params["ln2_b"], wq, bq)
    param_bytes = sum(a.size * a.dtype.itemsize for a in resident)
    cost = pl.CostEstimate(
        flops=2 * n_pad * (tile_b + obs_dim * h1 + TA * h1 + h1 * h2 + h2 * A_PAD),
        transcendentals=3 * n_pad,
        bytes_accessed=(obs_p.size + act_p.size + n_pad * A_PAD) * 4 + param_bytes,
    )

    q_pad = pl.pallas_call(
        coma_q_mlp_kernel,
        out_shape=jax.ShapeDtypeStruct((n_pad, A_PAD), f32),
        grid=grid,
        in_specs=in_specs,
        out_specs=out_specs,
        compiler_params=pltpu.CompilerParams(
            dimension_semantics=("parallel",)),
        cost_estimate=cost,
    )(expand, obs_p, act_p,
      g_obs, b_obs, g_act, b_act,
      w1o, w1a, params["b1"], params["ln1_g"], params["ln1_b"],
      w2, params["b2"], params["ln2_g"], params["ln2_b"],
      wq, bq)

    return q_pad[:B * T, :action_dim]


# ------------------------------ glue / model ------------------------------ #

def init_coma_q_params(key, obs_dim, num_agents, action_dim, hidden_sizes):
    """Deterministic parameter init (orthogonal weights, zero biases)."""
    state_dim = obs_dim + action_dim * num_agents
    h1, h2 = hidden_sizes
    k1, k2, k3 = jax.random.split(key, 3)
    ortho = jax.nn.initializers.orthogonal()

    def rowv(v):  # 1D params stored as (1, F) for clean lane layout / broadcast
        return v.reshape(1, -1).astype(jnp.float32)

    return {
        "ln0_g": rowv(jnp.ones((state_dim,))),
        "ln0_b": rowv(jnp.zeros((state_dim,))),
        "w1": ortho(k1, (state_dim, h1), jnp.float32),
        "b1": rowv(jnp.zeros((h1,))),
        "ln1_g": rowv(jnp.ones((h1,))),
        "ln1_b": rowv(jnp.zeros((h1,))),
        "w2": ortho(k2, (h1, h2), jnp.float32),
        "b2": rowv(jnp.zeros((h2,))),
        "ln2_g": rowv(jnp.ones((h2,))),
        "ln2_b": rowv(jnp.zeros((h2,))),
        "wq": ortho(k3, (h2, action_dim), jnp.float32),
        "bq": rowv(jnp.zeros((action_dim,))),
    }


def _build_masked_actions(action, num_agents, action_dim):
    """PyTorch: one_hot -> view(B,1,-1).repeat(1,T,1) -> * (1 - eye(T)) mask."""
    f32 = jnp.float32
    B = action.shape[0]
    T, A = num_agents, action_dim
    act_1h = jax.nn.one_hot(action[..., 0].astype(jnp.int32), A, dtype=f32)  # (B,T,A)
    act_rep = jnp.tile(act_1h.reshape(B, 1, T * A), (1, T, 1))               # (B,T,T*A)
    agent_mask = 1.0 - jnp.eye(T, dtype=f32)
    agent_mask = jnp.repeat(agent_mask.reshape(-1, 1), A, axis=1).reshape(T, T * A)
    return (act_rep * agent_mask[None]).reshape(B * T, T * A)
    # TODO(synk): the one-hot slab could be replaced by scalar-prefetched action
    # indices + an in-kernel gather-accumulate of W1_act rows.


@functools.partial(jax.jit, static_argnames=("num_agents", "action_dim"))
def coma_q_forward(params, cent_obs, action, rnn_states, masks, *,
                   num_agents, action_dim):
    """Mirrors ComaQNet.forward (non-recurrent config).

    cent_obs: (B, obs_dim) float; action: (B, T, 1) int.
    Returns (q_values (B, T, A), rnn_states).
    """
    del masks  # unused in the non-recurrent configuration
    B = cent_obs.shape[0]
    T, A = num_agents, action_dim
    cent_obs = cent_obs.astype(jnp.float32)
    act_masked = _build_masked_actions(action, T, A)          # (B*T, T*A)
    q_flat = _run_coma_q_mlp(cent_obs, act_masked, params,
                             num_agents=T, action_dim=A)       # Pallas
    return q_flat.reshape(B, T, A), rnn_states.astype(jnp.float32)


# ------------------------- pure-JAX f32 reference -------------------------- #

def coma_q_forward_ref(params, cent_obs, action, num_agents, action_dim):
    f32 = jnp.float32
    B = cent_obs.shape[0]
    T, A = num_agents, action_dim
    cent_obs = cent_obs.astype(f32)
    act_masked = _build_masked_actions(action, T, A).reshape(B, T, T * A)
    obs_rep = jnp.tile(cent_obs.reshape(B, 1, -1), (1, T, 1))
    x = jnp.concatenate([obs_rep, act_masked], axis=-1).reshape(B * T, -1)
    x = _layernorm(x, params["ln0_g"], params["ln0_b"])
    h = jnp.maximum(x @ params["w1"] + params["b1"], 0.0)
    h = _layernorm(h, params["ln1_g"], params["ln1_b"])
    h = jnp.maximum(h @ params["w2"] + params["b2"], 0.0)
    h = _layernorm(h, params["ln2_g"], params["ln2_b"])
    q = h @ params["wq"] + params["bq"]
    return q.reshape(B, T, A)


# --------------------------------- main ------------------------------------ #

if __name__ == "__main__":
    B = 2            # batch
    NUM_AGENTS = 3   # T
    ACTION_DIM = 5   # A (discrete action space size)
    OBS_DIM = 12     # centralized obs dim
    CRITIC_HIDDEN_X = 1
    HIDDEN_SIZES = [32 * CRITIC_HIDDEN_X, 32 * CRITIC_HIDDEN_X]
    RECURRENT_N = 1

    key = jax.random.PRNGKey(0)
    kp, ko, ka, kr = jax.random.split(key, 4)

    params = init_coma_q_params(kp, OBS_DIM, NUM_AGENTS, ACTION_DIM, HIDDEN_SIZES)

    cent_obs = jax.random.normal(ko, (B, OBS_DIM), dtype=jnp.float32)
    action = jax.random.randint(ka, (B, NUM_AGENTS, 1), 0, ACTION_DIM)
    rnn_states = jax.random.normal(
        kr, (B, NUM_AGENTS, RECURRENT_N, HIDDEN_SIZES[-1]), dtype=jnp.float32)
    masks = jnp.ones((B, NUM_AGENTS, 1), dtype=jnp.float32)

    q_values, rnn_out = coma_q_forward(params, cent_obs, action, rnn_states,
                                       masks, num_agents=NUM_AGENTS,
                                       action_dim=ACTION_DIM)
    q_values = jax.block_until_ready(q_values)
    rnn_out = jax.block_until_ready(rnn_out)

    q_ref = coma_q_forward_ref(params, cent_obs, action, NUM_AGENTS, ACTION_DIM)
    max_err = float(jnp.max(jnp.abs(q_values - q_ref)))

    assert q_values.shape == (B, NUM_AGENTS, ACTION_DIM)
    assert rnn_out.shape == rnn_states.shape
    assert max_err < 0.1, f"kernel deviates from f32 reference: {max_err}"
    print("KERNEL_OK")
</pallas_src>

<mosaic_0001>
module attributes {stable_mosaic.version = 11 : i64} {
  func.func @coma_q_mlp_kernel(%arg0: i32, %arg1: memref<24x8xf32, #tpu.memory_space<vmem>>, %arg2: memref<8x12xf32, #tpu.memory_space<vmem>>, %arg3: memref<24x15xf32, #tpu.memory_space<vmem>>, %arg4: memref<1x12xf32, #tpu.memory_space<vmem>>, %arg5: memref<1x12xf32, #tpu.memory_space<vmem>>, %arg6: memref<1x15xf32, #tpu.memory_space<vmem>>, %arg7: memref<1x15xf32, #tpu.memory_space<vmem>>, %arg8: memref<12x32xbf16, #tpu.memory_space<vmem>>, %arg9: memref<15x32xbf16, #tpu.memory_space<vmem>>, %arg10: memref<1x32xf32, #tpu.memory_space<vmem>>, %arg11: memref<1x32xf32, #tpu.memory_space<vmem>>, %arg12: memref<1x32xf32, #tpu.memory_space<vmem>>, %arg13: memref<32x32xbf16, #tpu.memory_space<vmem>>, %arg14: memref<1x32xf32, #tpu.memory_space<vmem>>, %arg15: memref<1x32xf32, #tpu.memory_space<vmem>>, %arg16: memref<1x32xf32, #tpu.memory_space<vmem>>, %arg17: memref<32x128xbf16, #tpu.memory_space<vmem>>, %arg18: memref<1x128xf32, #tpu.memory_space<vmem>>, %arg19: memref<24x128xf32, #tpu.memory_space<vmem>>) attributes {dimension_semantics = [#tpu.dimension_semantics<parallel>], iteration_bounds = array<i64: 1>, scalar_prefetch = 0 : i64, scratch_operands = 0 : i64, tpu.core_type = #tpu.core_type<tc>, window_params = [{pipeline_mode = #tpu.pipeline_mode<synchronous>, transform_indices = @transform_0, window_bounds = array<i64: 24, 8>}, {transform_indices = @transform_1, window_bounds = array<i64: 8, 12>}, {transform_indices = @transform_2, window_bounds = array<i64: 24, 15>}, {pipeline_mode = #tpu.pipeline_mode<synchronous>, transform_indices = @transform_3, window_bounds = array<i64: 1, 12>}, {pipeline_mode = #tpu.pipeline_mode<synchronous>, transform_indices = @transform_4, window_bounds = array<i64: 1, 12>}, {pipeline_mode = #tpu.pipeline_mode<synchronous>, transform_indices = @transform_5, window_bounds = array<i64: 1, 15>}, {pipeline_mode = #tpu.pipeline_mode<synchronous>, transform_indices = @transform_6, window_bounds = array<i64: 1, 15>}, {pipeline_mode = #tpu.pipeline_mode<synchronous>, transform_indices = @transform_7, window_bounds = array<i64: 12, 32>}, {pipeline_mode = #tpu.pipeline_mode<synchronous>, transform_indices = @transform_8, window_bounds = array<i64: 15, 32>}, {pipeline_mode = #tpu.pipeline_mode<synchronous>, transform_indices = @transform_9, window_bounds = array<i64: 1, 32>}, {pipeline_mode = #tpu.pipeline_mode<synchronous>, transform_indices = @transform_10, window_bounds = array<i64: 1, 32>}, {pipeline_mode = #tpu.pipeline_mode<synchronous>, transform_indices = @transform_11, window_bounds = array<i64: 1, 32>}, {pipeline_mode = #tpu.pipeline_mode<synchronous>, transform_indices = @transform_12, window_bounds = array<i64: 32, 32>}, {pipeline_mode = #tpu.pipeline_mode<synchronous>, transform_indices = @transform_13, window_bounds = array<i64: 1, 32>}, {pipeline_mode = #tpu.pipeline_mode<synchronous>, transform_indices = @transform_14, window_bounds = array<i64: 1, 32>}, {pipeline_mode = #tpu.pipeline_mode<synchronous>, transform_indices = @transform_15, window_bounds = array<i64: 1, 32>}, {pipeline_mode = #tpu.pipeline_mode<synchronous>, transform_indices = @transform_16, window_bounds = array<i64: 32, 128>}, {pipeline_mode = #tpu.pipeline_mode<synchronous>, transform_indices = @transform_17, window_bounds = array<i64: 1, 128>}, {transform_indices = @transform_18, window_bounds = array<i64: 24, 128>}]} {
    %c0 = arith.constant 0 : index
    %c0_0 = arith.constant 0 : index
    %0 = vector.load %arg1[%c0, %c0_0] : memref<24x8xf32, #tpu.memory_space<vmem>>, vector<24x8xf32>
    %c0_1 = arith.constant 0 : index
    %c0_2 = arith.constant 0 : index
    %1 = vector.load %arg2[%c0_1, %c0_2] : memref<8x12xf32, #tpu.memory_space<vmem>>, vector<8x12xf32>
    %cst = arith.constant dense<0.000000e+00> : vector<24x12xf32>
    %2 = tpu.matmul %0, %1, %cst {dimension_numbers = #tpu.dot_dimension_numbers<[1], [0], [0], [1], [0, 0, 1, 1], [], []>, precision = #tpu.contract_precision<fp32>} : vector<24x8xf32>, vector<8x12xf32>, vector<24x12xf32> -> vector<24x12xf32>
    %c0_3 = arith.constant 0 : index
    %c0_4 = arith.constant 0 : index
    %3 = vector.load %arg3[%c0_3, %c0_4] : memref<24x15xf32, #tpu.memory_space<vmem>>, vector<24x15xf32>
    %cst_5 = arith.constant dense<0.000000e+00> : vector<24xf32>
    %4 = vector.multi_reduction <add>, %2, %cst_5 [1] : vector<24x12xf32> to vector<24xf32>
    %5 = vector.shape_cast %4 : vector<24xf32> to vector<24x1xf32>
    %cst_6 = arith.constant dense<0.000000e+00> : vector<24xf32>
    %6 = vector.multi_reduction <add>, %3, %cst_6 [1] : vector<24x15xf32> to vector<24xf32>
    %7 = vector.shape_cast %6 : vector<24xf32> to vector<24x1xf32>
    %8 = arith.addf %5, %7 : vector<24x1xf32>
    %cst_7 = arith.constant 0.0370370373 : f32
    %9 = vector.broadcast %cst_7 : f32 to vector<24x1xf32>
    %10 = arith.mulf %8, %9 : vector<24x1xf32>
    %11 = vector.broadcast %10 : vector<24x1xf32> to vector<24x12xf32>
    %12 = arith.subf %2, %11 : vector<24x12xf32>
    %13 = vector.broadcast %10 : vector<24x1xf32> to vector<24x15xf32>
    %14 = arith.subf %3, %13 : vector<24x15xf32>
    %15 = arith.mulf %12, %12 : vector<24x12xf32>
    %cst_8 = arith.constant dense<0.000000e+00> : vector<24xf32>
    %16 = vector.multi_reduction <add>, %15, %cst_8 [1] : vector<24x12xf32> to vector<24xf32>
    %17 = vector.shape_cast %16 : vector<24xf32> to vector<24x1xf32>
    %18 = arith.mulf %14, %14 : vector<24x15xf32>
    %cst_9 = arith.constant dense<0.000000e+00> : vector<24xf32>
    %19 = vector.multi_reduction <add>, %18, %cst_9 [1] : vector<24x15xf32> to vector<24xf32>
    %20 = vector.shape_cast %19 : vector<24xf32> to vector<24x1xf32>
    %21 = arith.addf %17, %20 : vector<24x1xf32>
    %cst_10 = arith.constant 0.0370370373 : f32
    %22 = vector.broadcast %cst_10 : f32 to vector<24x1xf32>
    %23 = arith.mulf %21, %22 : vector<24x1xf32>
    %cst_11 = arith.constant 9.99999974E-6 : f32
    %24 = vector.broadcast %cst_11 : f32 to vector<24x1xf32>
    %25 = arith.addf %23, %24 : vector<24x1xf32>
    %26 = math.rsqrt %25 : vector<24x1xf32>
    %27 = vector.broadcast %26 : vector<24x1xf32> to vector<24x12xf32>
    %28 = arith.mulf %12, %27 : vector<24x12xf32>
    %c0_12 = arith.constant 0 : index
    %c0_13 = arith.constant 0 : index
    %29 = vector.load %arg4[%c0_12, %c0_13] : memref<1x12xf32, #tpu.memory_space<vmem>>, vector<1x12xf32>
    %30 = vector.broadcast %29 : vector<1x12xf32> to vector<24x12xf32>
    %31 = arith.mulf %28, %30 : vector<24x12xf32>
    %c0_14 = arith.constant 0 : index
    %c0_15 = arith.constant 0 : index
    %32 = vector.load %arg5[%c0_14, %c0_15] : memref<1x12xf32, #tpu.memory_space<vmem>>, vector<1x12xf32>
    %33 = vector.broadcast %32 : vector<1x12xf32> to vector<24x12xf32>
    %34 = arith.addf %31, %33 : vector<24x12xf32>
    %35 = vector.broadcast %26 : vector<24x1xf32> to vector<24x15xf32>
    %36 = arith.mulf %14, %35 : vector<24x15xf32>
    %c0_16 = arith.constant 0 : index
    %c0_17 = arith.constant 0 : index
    %37 = vector.load %arg6[%c0_16, %c0_17] : memref<1x15xf32, #tpu.memory_space<vmem>>, vector<1x15xf32>
    %38 = vector.broadcast %37 : vector<1x15xf32> to vector<24x15xf32>
    %39 = arith.mulf %36, %38 : vector<24x15xf32>
    %c0_18 = arith.constant 0 : index
    %c0_19 = arith.constant 0 : index
    %40 = vector.load %arg7[%c0_18, %c0_19] : memref<1x15xf32, #tpu.memory_space<vmem>>, vector<1x15xf32>
    %41 = vector.broadcast %40 : vector<1x15xf32> to vector<24x15xf32>
    %42 = arith.addf %39, %41 : vector<24x15xf32>
    %43 = arith.truncf %34 : vector<24x12xf32> to vector<24x12xbf16>
    %c0_20 = arith.constant 0 : index
    %c0_21 = arith.constant 0 : index
    %44 = vector.load %arg8[%c0_20, %c0_21] : memref<12x32xbf16, #tpu.memory_space<vmem>>, vector<12x32xbf16>
    %cst_22 = arith.constant dense<0.000000e+00> : vector<24x32xf32>
    %45 = tpu.matmul %43, %44, %cst_22 {dimension_numbers = #tpu.dot_dimension_numbers<[1], [0], [0], [1], [0, 0, 1, 1], [], []>} : vector<24x12xbf16>, vector<12x32xbf16>, vector<24x32xf32> -> vector<24x32xf32>
    %46 = arith.truncf %42 : vector<24x15xf32> to vector<24x15xbf16>
    %c0_23 = arith.constant 0 : index
    %c0_24 = arith.constant 0 : index
    %47 = vector.load %arg9[%c0_23, %c0_24] : memref<15x32xbf16, #tpu.memory_space<vmem>>, vector<15x32xbf16>
    %cst_25 = arith.constant dense<0.000000e+00> : vector<24x32xf32>
    %48 = tpu.matmul %46, %47, %cst_25 {dimension_numbers = #tpu.dot_dimension_numbers<[1], [0], [0], [1], [0, 0, 1, 1], [], []>} : vector<24x15xbf16>, vector<15x32xbf16>, vector<24x32xf32> -> vector<24x32xf32>
    %49 = arith.addf %45, %48 : vector<24x32xf32>
    %c0_26 = arith.constant 0 : index
    %c0_27 = arith.constant 0 : index
    %50 = vector.load %arg10[%c0_26, %c0_27] : memref<1x32xf32, #tpu.memory_space<vmem>>, vector<1x32xf32>
    %51 = vector.broadcast %50 : vector<1x32xf32> to vector<24x32xf32>
    %52 = arith.addf %49, %51 : vector<24x32xf32>
    %cst_28 = arith.constant 0.000000e+00 : f32
    %53 = vector.broadcast %cst_28 : f32 to vector<24x32xf32>
    %54 = arith.maximumf %52, %53 : vector<24x32xf32>
    %c0_29 = arith.constant 0 : index
    %c0_30 = arith.constant 0 : index
    %55 = vector.load %arg11[%c0_29, %c0_30] : memref<1x32xf32, #tpu.memory_space<vmem>>, vector<1x32xf32>
    %c0_31 = arith.constant 0 : index
    %c0_32 = arith.constant 0 : index
    %56 = vector.load %arg12[%c0_31, %c0_32] : memref<1x32xf32, #tpu.memory_space<vmem>>, vector<1x32xf32>
    %cst_33 = arith.constant dense<0.000000e+00> : vector<24xf32>
    %57 = vector.multi_reduction <add>, %54, %cst_33 [1] : vector<24x32xf32> to vector<24xf32>
    %58 = vector.shape_cast %57 : vector<24xf32> to vector<24x1xf32>
    %cst_34 = arith.constant 3.200000e+01 : f32
    %59 = vector.broadcast %cst_34 : f32 to vector<24x1xf32>
    %60 = arith.divf %58, %59 : vector<24x1xf32>
    %61 = vector.broadcast %60 : vector<24x1xf32> to vector<24x32xf32>
    %62 = arith.subf %54, %61 : vector<24x32xf32>
    %63 = arith.mulf %62, %62 : vector<24x32xf32>
    %cst_35 = arith.constant dense<0.000000e+00> : vector<24xf32>
    %64 = vector.multi_reduction <add>, %63, %cst_35 [1] : vector<24x32xf32> to vector<24xf32>
    %65 = vector.shape_cast %64 : vector<24xf32> to vector<24x1xf32>
    %cst_36 = arith.constant 3.200000e+01 : f32
    %66 = vector.broadcast %cst_36 : f32 to vector<24x1xf32>
    %67 = arith.divf %65, %66 : vector<24x1xf32>
    %cst_37 = arith.constant 9.99999974E-6 : f32
    %68 = vector.broadcast %cst_37 : f32 to vector<24x1xf32>
    %69 = arith.addf %67, %68 : vector<24x1xf32>
    %70 = math.rsqrt %69 : vector<24x1xf32>
    %71 = vector.broadcast %70 : vector<24x1xf32> to vector<24x32xf32>
    %72 = arith.mulf %62, %71 : vector<24x32xf32>
    %73 = vector.broadcast %55 : vector<1x32xf32> to vector<24x32xf32>
    %74 = arith.mulf %72, %73 : vector<24x32xf32>
    %75 = vector.broadcast %56 : vector<1x32xf32> to vector<24x32xf32>
    %76 = arith.addf %74, %75 : vector<24x32xf32>
    %77 = arith.truncf %76 : vector<24x32xf32> to vector<24x32xbf16>
    %c0_38 = arith.constant 0 : index
    %c0_39 = arith.constant 0 : index
    %78 = vector.load %arg13[%c0_38, %c0_39] : memref<32x32xbf16, #tpu.memory_space<vmem>>, vector<32x32xbf16>
    %cst_40 = arith.constant dense<0.000000e+00> : vector<24x32xf32>
    %79 = tpu.matmul %77, %78, %cst_40 {dimension_numbers = #tpu.dot_dimension_numbers<[1], [0], [0], [1], [0, 0, 1, 1], [], []>} : vector<24x32xbf16>, vector<32x32xbf16>, vector<24x32xf32> -> vector<24x32xf32>
    %c0_41 = arith.constant 0 : index
    %c0_42 = arith.constant 0 : index
    %80 = vector.load %arg14[%c0_41, %c0_42] : memref<1x32xf32, #tpu.memory_space<vmem>>, vector<1x32xf32>
    %81 = vector.broadcast %80 : vector<1x32xf32> to vector<24x32xf32>
    %82 = arith.addf %79, %81 : vector<24x32xf32>
    %cst_43 = arith.constant 0.000000e+00 : f32
    %83 = vector.broadcast %cst_43 : f32 to vector<24x32xf32>
    %84 = arith.maximumf %82, %83 : vector<24x32xf32>
    %c0_44 = arith.constant 0 : index
    %c0_45 = arith.constant 0 : index
    %85 = vector.load %arg15[%c0_44, %c0_45] : memref<1x32xf32, #tpu.memory_space<vmem>>, vector<1x32xf32>
    %c0_46 = arith.constant 0 : index
    %c0_47 = arith.constant 0 : index
    %86 = vector.load %arg16[%c0_46, %c0_47] : memref<1x32xf32, #tpu.memory_space<vmem>>, vector<1x32xf32>
    %cst_48 = arith.constant dense<0.000000e+00> : vector<24xf32>
    %87 = vector.multi_reduction <add>, %84, %cst_48 [1] : vector<24x32xf32> to vector<24xf32>
    %88 = vector.shape_cast %87 : vector<24xf32> to vector<24x1xf32>
    %cst_49 = arith.constant 3.200000e+01 : f32
    %89 = vector.broadcast %cst_49 : f32 to vector<24x1xf32>
    %90 = arith.divf %88, %89 : vector<24x1xf32>
    %91 = vector.broadcast %90 : vector<24x1xf32> to vector<24x32xf32>
    %92 = arith.subf %84, %91 : vector<24x32xf32>
    %93 = arith.mulf %92, %92 : vector<24x32xf32>
    %cst_50 = arith.constant dense<0.000000e+00> : vector<24xf32>
    %94 = vector.multi_reduction <add>, %93, %cst_50 [1] : vector<24x32xf32> to vector<24xf32>
    %95 = vector.shape_cast %94 : vector<24xf32> to vector<24x1xf32>
    %cst_51 = arith.constant 3.200000e+01 : f32
    %96 = vector.broadcast %cst_51 : f32 to vector<24x1xf32>
    %97 = arith.divf %95, %96 : vector<24x1xf32>
    %cst_52 = arith.constant 9.99999974E-6 : f32
    %98 = vector.broadcast %cst_52 : f32 to vector<24x1xf32>
    %99 = arith.addf %97, %98 : vector<24x1xf32>
    %100 = math.rsqrt %99 : vector<24x1xf32>
    %101 = vector.broadcast %100 : vector<24x1xf32> to vector<24x32xf32>
    %102 = arith.mulf %92, %101 : vector<24x32xf32>
    %103 = vector.broadcast %85 : vector<1x32xf32> to vector<24x32xf32>
    %104 = arith.mulf %102, %103 : vector<24x32xf32>
    %105 = vector.broadcast %86 : vector<1x32xf32> to vector<24x32xf32>
    %106 = arith.addf %104, %105 : vector<24x32xf32>
    %107 = arith.truncf %106 : vector<24x32xf32> to vector<24x32xbf16>
    %c0_53 = arith.constant 0 : index
    %c0_54 = arith.constant 0 : index
    %108 = vector.load %arg17[%c0_53, %c0_54] : memref<32x128xbf16, #tpu.memory_space<vmem>>, vector<32x128xbf16>
    %cst_55 = arith.constant dense<0.000000e+00> : vector<24x128xf32>
    %109 = tpu.matmul %107, %108, %cst_55 {dimension_numbers = #tpu.dot_dimension_numbers<[1], [0], [0], [1], [0, 0, 1, 1], [], []>} : vector<24x32xbf16>, vector<32x128xbf16>, vector<24x128xf32> -> vector<24x128xf32>
    %c0_56 = arith.constant 0 : index
    %c0_57 = arith.constant 0 : index
    %110 = vector.load %arg18[%c0_56, %c0_57] : memref<1x128xf32, #tpu.memory_space<vmem>>, vector<1x128xf32>
    %111 = vector.broadcast %110 : vector<1x128xf32> to vector<24x128xf32>
    %112 = arith.addf %109, %111 : vector<24x128xf32>
    %c0_58 = arith.constant 0 : index
    %c0_59 = arith.constant 0 : index
    %113 = vector.load %arg19[%c0_58, %c0_59] : memref<24x128xf32, #tpu.memory_space<vmem>>, vector<24x128xf32>
    tpu.vector_store %arg19[%c0_58, %c0_59], %112 {strides = array<i32>} : memref<24x128xf32, #tpu.memory_space<vmem>>, vector<24x128xf32>,
    return
  }
  func.func @transform_0(%arg0: i32) -> (i32, i32) {
    %c0_i32 = arith.constant 0 : i32
    %c0_i32_0 = arith.constant 0 : i32
    %c0_i32_1 = arith.constant 0 : i32
    return %c0_i32, %c0_i32_0 : i32, i32
  }
  func.func @transform_1(%arg0: i32) -> (i32, i32) {
    %c0_i32 = arith.constant 0 : i32
    %c0_i32_0 = arith.constant 0 : i32
    return %arg0, %c0_i32 : i32, i32
  }
  func.func @transform_2(%arg0: i32) -> (i32, i32) {
    %c0_i32 = arith.constant 0 : i32
    %c0_i32_0 = arith.constant 0 : i32
    return %arg0, %c0_i32 : i32, i32
  }
  func.func @transform_3(%arg0: i32) -> (i32, i32) {
    %c0_i32 = arith.constant 0 : i32
    %c0_i32_0 = arith.constant 0 : i32
    %c0_i32_1 = arith.constant 0 : i32
    return %c0_i32, %c0_i32_0 : i32, i32
  }
  func.func @transform_4(%arg0: i32) -> (i32, i32) {
    %c0_i32 = arith.constant 0 : i32
    %c0_i32_0 = arith.constant 0 : i32
    %c0_i32_1 = arith.constant 0 : i32
    return %c0_i32, %c0_i32_0 : i32, i32
  }
  func.func @transform_5(%arg0: i32) -> (i32, i32) {
    %c0_i32 = arith.constant 0 : i32
    %c0_i32_0 = arith.constant 0 : i32
    %c0_i32_1 = arith.constant 0 : i32
    return %c0_i32, %c0_i32_0 : i32, i32
  }
  func.func @transform_6(%arg0: i32) -> (i32, i32) {
    %c0_i32 = arith.constant 0 : i32
    %c0_i32_0 = arith.constant 0 : i32
    %c0_i32_1 = arith.constant 0 : i32
    return %c0_i32, %c0_i32_0 : i32, i32
  }
  func.func @transform_7(%arg0: i32) -> (i32, i32) {
    %c0_i32 = arith.constant 0 : i32
    %c0_i32_0 = arith.constant 0 : i32
    %c0_i32_1 = arith.constant 0 : i32
    return %c0_i32, %c0_i32_0 : i32, i32
  }
  func.func @transform_8(%arg0: i32) -> (i32, i32) {
    %c0_i32 = arith.constant 0 : i32
    %c0_i32_0 = arith.constant 0 : i32
    %c0_i32_1 = arith.constant 0 : i32
    return %c0_i32, %c0_i32_0 : i32, i32
  }
  func.func @transform_9(%arg0: i32) -> (i32, i32) {
    %c0_i32 = arith.constant 0 : i32
    %c0_i32_0 = arith.constant 0 : i32
    %c0_i32_1 = arith.constant 0 : i32
    return %c0_i32, %c0_i32_0 : i32, i32
  }
  func.func @transform_10(%arg0: i32) -> (i32, i32) {
    %c0_i32 = arith.constant 0 : i32
    %c0_i32_0 = arith.constant 0 : i32
    %c0_i32_1 = arith.constant 0 : i32
    return %c0_i32, %c0_i32_0 : i32, i32
  }
  func.func @transform_11(%arg0: i32) -> (i32, i32) {
    %c0_i32 = arith.constant 0 : i32
    %c0_i32_0 = arith.constant 0 : i32
    %c0_i32_1 = arith.constant 0 : i32
    return %c0_i32, %c0_i32_0 : i32, i32
  }
  func.func @transform_12(%arg0: i32) -> (i32, i32) {
    %c0_i32 = arith.constant 0 : i32
    %c0_i32_0 = arith.constant 0 : i32
    %c0_i32_1 = arith.constant 0 : i32
    return %c0_i32, %c0_i32_0 : i32, i32
  }
  func.func @transform_13(%arg0: i32) -> (i32, i32) {
    %c0_i32 = arith.constant 0 : i32
    %c0_i32_0 = arith.constant 0 : i32
    %c0_i32_1 = arith.constant 0 : i32
    return %c0_i32, %c0_i32_0 : i32, i32
  }
  func.func @transform_14(%arg0: i32) -> (i32, i32) {
    %c0_i32 = arith.constant 0 : i32
    %c0_i32_0 = arith.constant 0 : i32
    %c0_i32_1 = arith.constant 0 : i32
    return %c0_i32, %c0_i32_0 : i32, i32
  }
  func.func @transform_15(%arg0: i32) -> (i32, i32) {
    %c0_i32 = arith.constant 0 : i32
    %c0_i32_0 = arith.constant 0 : i32
    %c0_i32_1 = arith.constant 0 : i32
    return %c0_i32, %c0_i32_0 : i32, i32
  }
  func.func @transform_16(%arg0: i32) -> (i32, i32) {
    %c0_i32 = arith.constant 0 : i32
    %c0_i32_0 = arith.constant 0 : i32
    %c0_i32_1 = arith.constant 0 : i32
    return %c0_i32, %c0_i32_0 : i32, i32
  }
  func.func @transform_17(%arg0: i32) -> (i32, i32) {
    %c0_i32 = arith.constant 0 : i32
    %c0_i32_0 = arith.constant 0 : i32
    %c0_i32_1 = arith.constant 0 : i32
    return %c0_i32, %c0_i32_0 : i32, i32
  }
  func.func @transform_18(%arg0: i32) -> (i32, i32) {
    %c0_i32 = arith.constant 0 : i32
    %c0_i32_0 = arith.constant 0 : i32
    return %arg0, %c0_i32 : i32, i32
  }
}

</mosaic_0001>

<bundles_post_ra>
// kernel: mul.5
= control target key start
LH: loop header
LB: loop body
LE: loop exit
PB: predicated region body
PF: predicated region fallthrough
CT: control target
= control target key end

     0   :  { %s29_s8 = smov 10   ;;  %vm3_vm0 = vcmask 39936   ;;  %vm9_vm1 = vcmask 121936   ;;  %vm15_vm2 = vcmask 80936   ;;  %s53_s0 = inlined_call_operand.vmem [shape: f32[9,1,5], index: 0, kind: input, shape index: {}]   ;;  %s54_s1 = inlined_call_operand.vmem [shape: f32[3,15], index: 1, kind: output, shape index: {}]  }
   0x1   :  { %v25_v0 = vld [vmem:[%s53_s0 + $0x2] ss:$3 sm:$0x7]   ;;  %v2_v1 = vld [vmem:[%s53_s0] ss:$3 sm:$0x7]  }
   0x2   :  { %7 = vrot.lane.b32.xlu0 %v25_v0, %s29_s8  ;;  %v26_v2 = vld [vmem:[%s53_s0 + $0x1] ss:$3 sm:$0x7]   ;;  %4 = vst.msk [vmem:[#allocation0] sm:$0x7] %vm3_vm0, %v2_v1   ;;  %s30_s0 = smov 5  }
   0x6   :  { %13 = vrot.lane.b32.xlu0 %v26_v2, %s30_s0 }
  0x74   :  { %v8_v3 = vpop.permute.xlu0 %7  }
  0x75   :  { %10 = vst.msk [vmem:[#allocation0] sm:$0x7] %vm9_vm1, %v8_v3  }
  0x78   :  { %v14_v4 = vpop.permute.xlu0 %13  }
  0x79   :  { %16 = vst.msk [vmem:[#allocation0] sm:$0x7] %vm15_vm2, %v14_v4  }
  0x80   :  { %v21_v5 = vld [vmem:[#allocation0] sm:$0xf] }
  0x81   :  { %24 = vst [vmem:[%s54_s1] sm:$0xf] %v21_v5 }

// kernel: coma_q_forward.1
= control target key start
LH: loop header
LB: loop body
LE: loop exit
PB: predicated region body
PF: predicated region fallthrough
CT: control target
= control target key end

     0   :  { %vm64_vm0 = vcmask 64512   ;;  %v1346_v0 = vmov 0.0   ;;  %vm1347_vm1 = vmmov 0   ;;  %vm619_vm2 = vcmask 121856   ;;  %s1644_s1 = inlined_call_operand.vmem [shape: f32[8,12], index: 1, kind: input, shape index: {}]   ;;  %s1645_s0 = inlined_call_operand.vmem [shape: f32[24,8], index: 0, kind: input, shape index: {}]   ;;  %s1646_s2 = inlined_call_operand.vmem [shape: f32[24,15], index: 2, kind: input, shape index: {}]   ;;  %s1647_s8 = inlined_call_operand.vmem [shape: bf16[15,32], index: 8, kind: input, shape index: {}]   ;;  %s1648_s7 = inlined_call_operand.vmem [shape: bf16[12,32], index: 7, kind: input, shape index: {}]   ;;  %s1649_s5 = inlined_call_operand.vmem [shape: f32[1,15], index: 5, kind: input, shape index: {}]   ;;  %s1650_s3 = inlined_call_operand.vmem [shape: f32[1,12], index: 3, kind: input, shape index: {}]   ;;  %s1651_s6 = inlined_call_operand.vmem [shape: f32[1,15], index: 6, kind: input, shape index: {}]   ;;  %s1652_s4 = inlined_call_operand.vmem [shape: f32[1,12], index: 4, kind: input, shape index: {}]   ;;  %s1653_s9 = inlined_call_operand.vmem [shape: f32[1,32], index: 9, kind: input, shape index: {}]   ;;  %s1654_s12 = inlined_call_operand.vmem [shape: bf16[32,32], index: 12, kind: input, shape index: {}]   ;;  %s1655_s10 = inlined_call_operand.vmem [shape: f32[1,32], index: 10, kind: input, shape index: {}]   ;;  %s1656_s11 = inlined_call_operand.vmem [shape: f32[1,32], index: 11, kind: input, shape index: {}]   ;;  %s1657_s13 = inlined_call_operand.vmem [shape: f32[1,32], index: 13, kind: input, shape index: {}]   ;;  %s1658_s16 = inlined_call_operand.vmem [shape: bf16[32,128], index: 16, kind: input, shape index: {}]   ;;  %s1659_s14 = inlined_call_operand.vmem [shape: f32[1,32], index: 14, kind: input, shape index: {}]   ;;  %s1660_s15 = inlined_call_operand.vmem [shape: f32[1,32], index: 15, kind: input, shape index: {}]   ;;  %s1661_s17 = inlined_call_operand.vmem [shape: f32[1,128], index: 17, kind: input, shape index: {}]   ;;  %s1662_s18 = inlined_call_operand.vmem [shape: f32[24,128], index: 18, kind: output, shape index: {}]  }
   0x1   :  { %1665 = sst [smem:[#allocation2_spill]] %s1644_s1  ;;  %1224 = vmatprep.subr.mxu0 %v1346_v0  ;;  %1235 = vmatprep.subr.mxu1 %v1346_v0  ;;  %vm609_vm3 = vcmask 97280   ;;  %vm742_vm4 = vcmask 1046528   ;;  %vm743_vm5 = vcmask 1047552   ;;  %vm808_vm6 = vcmask 1045504  }
   0x2   :  { %1666 = sst [smem:[#allocation3_spill]] %s1645_s0  ;;  %1226 = vmatprep.mubr.msk.f32.mxu0 %vm1347_vm1, %v1346_v0  ;;  %1237 = vmatprep.mubr.msk.f32.mxu1 %vm1347_vm1, %v1346_v0  ;;  %vm875_vm7 = vcmask 261120  }
   0x3   :  { %1667 = sst [smem:[#allocation4_spill]] %s1646_s2 }
   0x4   :  { %s1668_s29 = sld [smem:[#allocation2_spill]] }
   0x5   :  { %s1669_s19 = sld [smem:[#allocation3_spill]] }
   0x6   :  { %s1670_s24 = sld [smem:[#allocation4_spill]] }
   0xa   :  { %v63_v1 = vld [vmem:[%s1668_s29] sm:$0xff] }
   0xb   :  { %v60_v2 = vld [vmem:[%s1669_s19] sm:$0xff]  ;;  %v61_v3 = vld [vmem:[%s1669_s19 + $0x8] sm:$0xff]  ;;  %v105_v4 = vand.u32 4294901760, %v63_v1  ;;  %v62_v7 = vld [vmem:[%s1669_s19 + $0x10] sm:$0xff] }
   0xc   :  { %v66_v5 = vsel %vm64_vm0, %v60_v2, 0  ;;  %v69_v6 = vsel %vm64_vm0, %v61_v3, 0  ;;  %v72_v10 = vsel %vm64_vm0, %v62_v7, 0  ;;  %v1504_v28 = vld [vmem:[%s1670_s24] sm:$0xff]  ;;  %v1511_v30 = vld [vmem:[%s1670_s24 + $0x8] sm:$0xff]  ;;  %v1518_v32 = vld [vmem:[%s1670_s24 + $0x10] sm:$0xff] }
   0xd   :  { %v140_v8 = vand.u32 4294901760, %v66_v5  ;;  %v150_v9 = vand.u32 4294901760, %v69_v6  ;;  %1225 = vmatpush3.msra.mxu0 %v105_v4  ;;  %v202_v11 = vsub.f32 %v63_v1, %v105_v4  ;;  %v160_v12 = vand.u32 4294901760, %v72_v10 }
   0xe   :  { %1246 = vmatprep.subr.mxu0 %v1346_v0  ;;  %v620_v29 = vsel %vm619_vm2, %v1504_v28, 0.0  ;;  %v623_v31 = vsel %vm619_vm2, %v1511_v30, 0.0  ;;  %v626_v33 = vsel %vm619_vm2, %v1518_v32, 0.0 }
   0xf   :  { %v141_v13 = vsub.f32 %v66_v5, %v140_v8  ;;  %v151_v14 = vsub.f32 %v69_v6, %v150_v9  ;;  %v203_v15 = vand.u32 4294901760, %v202_v11  ;;  %v161_v16 = vsub.f32 %v72_v10, %v160_v12  ;;  %621 = vadd.xlane.f32.xlu1 %v620_v29 }
  0x11   :  { %v142_v17 = vand.u32 4294901760, %v141_v13  ;;  %v152_v18 = vand.u32 4294901760, %v151_v14  ;;  %v204_v19 = vsub.f32 %v202_v11, %v203_v15  ;;  %v162_v22 = vand.u32 4294901760, %v161_v16 }
  0x13   :  { %v143_v20 = vsub.f32 %v141_v13, %v142_v17  ;;  %v153_v21 = vsub.f32 %v151_v14, %v152_v18  ;;  %v205_v23 = vand.u32 4294901760, %v204_v19  ;;  %v163_v26 = vsub.f32 %v161_v16, %v162_v22  ;;  %624 = vadd.xlane.f32.xlu1 %v623_v31 }
  0x15   :  { %v144_v24 = vand.u32 4294901760, %v143_v20  ;;  %1236 = vmatpush3.msra.mxu1 %v205_v23  ;;  %v154_v25 = vand.u32 4294901760, %v153_v21  ;;  %v164_v27 = vand.u32 4294901760, %v163_v26 }
  0x16   :  { %1238 = vmatmul.mubr.f32.vlgmr.msra.gmra.mxu1 %v140_v8  ;;  %1257 = vmatprep.subr.mxu1 %v1346_v0 }
  0x17   :  { %1227 = vmatmul.mubr.f32.vlgmr.msra.gmra.mxu0 %v144_v24  ;;  %1258 = vmatpush3.msra.mxu1 %v105_v4 }
  0x18   :  { %1247 = vmatpush3.msra.mxu0 %v202_v11  ;;  %1229 = vmatprep.mubr.msk.f32.mxu0 %vm1347_vm1, %v1346_v0 }
  0x19   :  { %1240 = vmatprep.mubr.msk.f32.mxu1 %vm1347_vm1, %v1346_v0  ;;  %1268 = vmatprep.subr.mxu0 %v1346_v0 }
  0x1a   :  { %1241 = vmatmul.mubr.f32.gmra.mxu1 %v150_v9  ;;  %1279 = vmatprep.subr.mxu1 %v1346_v0 }
  0x1b   :  { %1230 = vmatmul.mubr.f32.gmra.mxu0 %v154_v25  ;;  %1243 = vmatprep.mubr.msk.f32.mxu1 %vm1347_vm1, %v1346_v0 }
  0x1c   :  { %1232 = vmatprep.mubr.msk.f32.mxu0 %vm1347_vm1, %v1346_v0  ;;  %627 = vadd.xlane.f32.xlu1 %v626_v33 }
  0x1e   :  { %1244 = vmatmul.mubr.f32.gmra.mxu1 %v160_v12 }
  0x1f   :  { %1233 = vmatmul.mubr.f32.gmra.mxu0 %v164_v27  ;;  %1259 = vmatprep.mubr.msk.f32.mxu1 %vm1347_vm1, %v1346_v0 }
  0x20   :  { %1248 = vmatprep.mubr.msk.f32.mxu0 %vm1347_vm1, %v1346_v0 }
  0x22   :  { %1260 = vmatmul.mubr.f32.vlgmr.msra.gmra.mxu1 %v142_v17 }
  0x23   :  { %1249 = vmatmul.mubr.f32.vlgmr.msra.gmra.mxu0 %v141_v13  ;;  %1280 = vmatpush3.msra.mxu1 %v105_v4 }
  0x24   :  { %1269 = vmatpush3.msra.mxu0 %v203_v15  ;;  %1251 = vmatprep.mubr.msk.f32.mxu0 %vm1347_vm1, %v1346_v0 }
  0x25   :  { %1262 = vmatprep.mubr.msk.f32.mxu1 %vm1347_vm1, %v1346_v0 }
  0x26   :  { %1263 = vmatmul.mubr.f32.gmra.mxu1 %v152_v18 }
  0x27   :  { %1252 = vmatmul.mubr.f32.gmra.mxu0 %v151_v14  ;;  %1265 = vmatprep.mubr.msk.f32.mxu1 %vm1347_vm1, %v1346_v0 }
  0x28   :  { %1254 = vmatprep.mubr.msk.f32.mxu0 %vm1347_vm1, %v1346_v0 }
  0x2a   :  { %1266 = vmatmul.mubr.f32.gmra.mxu1 %v162_v22 }
  0x2b   :  { %1255 = vmatmul.mubr.f32.gmra.mxu0 %v161_v16  ;;  %1281 = vmatprep.mubr.msk.f32.mxu1 %vm1347_vm1, %v1346_v0 }
  0x2c   :  { %1270 = vmatprep.mubr.msk.f32.mxu0 %vm1347_vm1, %v1346_v0 }
  0x2e   :  { %1282 = vmatmul.mubr.f32.vlgmr.msra.gmra.mxu1 %v140_v8 }
  0x2f   :  { %1271 = vmatmul.mubr.f32.vlgmr.msra.gmra.mxu0 %v140_v8  ;;  %1284 = vmatprep.mubr.msk.f32.mxu1 %vm1347_vm1, %v1346_v0 }
  0x30   :  { %1273 = vmatprep.mubr.msk.f32.mxu0 %vm1347_vm1, %v1346_v0 }
  0x32   :  { %1285 = vmatmul.mubr.f32.gmra.mxu1 %v150_v9 }
  0x33   :  { %1274 = vmatmul.mubr.f32.gmra.mxu0 %v150_v9  ;;  %1287 = vmatprep.mubr.msk.f32.mxu1 %vm1347_vm1, %v1346_v0 }
  0x34   :  { %1276 = vmatprep.mubr.msk.f32.mxu0 %vm1347_vm1, %v1346_v0 }
  0x36   :  { %1288 = vmatmul.mubr.f32.gmra.mxu1 %v160_v12 }
  0x37   :  { %1277 = vmatmul.mubr.f32.gmra.mxu0 %v160_v12 }
  0x98   :  { %v622_v24 = vpop.xlane.xlu1 %621 }
  0x9c   :  { %v625_v26 = vpop.xlane.xlu1 %624 }
  0xd6   :  { %v242_v35 = vpop.f32.mrf.mxu1 }
  0xd7   :  { %v146_v34 = vpop.f32.mrf.mxu0 }
  0xd8   :  { %v1239_v37 = vpop.f32.mrf.mxu1  ;;  %v243_v52 = vadd.f32 %v242_v35, %v146_v34 }
  0xd9   :  { %v1228_v36 = vpop.f32.mrf.mxu0 }
  0xda   :  { %v248_v39 = vpop.f32.mrf.mxu1  ;;  %v628_v36 = vpop.xlane.xlu1 %627 }
  0xdb   :  { %v156_v38 = vpop.f32.mrf.mxu0 }
  0xdc   :  { %v1242_v41 = vpop.f32.mrf.mxu1  ;;  %v249_v58 = vadd.f32 %v248_v39, %v156_v38 }
  0xdd   :  { %v1231_v40 = vpop.f32.mrf.mxu0 }
  0xde   :  { %v254_v43 = vpop.f32.mrf.mxu1 }
  0xdf   :  { %v166_v42 = vpop.f32.mrf.mxu0 }
  0xe0   :  { %v1245_v45 = vpop.f32.mrf.mxu1  ;;  %v255_v1 = vadd.f32 %v254_v43, %v166_v42 }
  0xe1   :  { %v1234_v44 = vpop.f32.mrf.mxu0 }
  0xe2   :  { %v416_v47 = vpop.f32.mrf.mxu1 }
  0xe3   :  { %v328_v46 = vpop.f32.mrf.mxu0 }
  0xe4   :  { %v1261_v49 = vpop.f32.mrf.mxu1  ;;  %v329_v55 = vadd.f32 %v328_v46, %v243_v52 }
  0xe5   :  { %v1250_v48 = vpop.f32.mrf.mxu0 }
  0xe6   :  { %v424_v51 = vpop.f32.mrf.mxu1  ;;  %v417_v61 = vadd.f32 %v416_v47, %v329_v55  ;;  %v1348_v55 = vmov 65535  }
  0xe7   :  { %v335_v50 = vpop.f32.mrf.mxu0 }
  0xe8   :  { %v1264_v54 = vpop.f32.mrf.mxu1  ;;  %v336_v62 = vadd.f32 %v335_v50, %v249_v58 }
  0xe9   :  { %v1253_v53 = vpop.f32.mrf.mxu0  ;;  %v1322_v54 = vld [vmem:[%s1647_s8] sm:$0xff]  }
  0xea   :  { %v432_v57 = vpop.f32.mrf.mxu1  ;;  %v425_v5 = vadd.f32 %v424_v51, %v336_v62 }
  0xeb   :  { %v342_v56 = vpop.f32.mrf.mxu0 }
  0xec   :  { %v1267_v60 = vpop.f32.mrf.mxu1  ;;  %v343_v6 = vadd.f32 %v342_v56, %v255_v1  ;;  %v744_v56 = vsel %vm742_vm4, 4294967295, %v1348_v55 }
  0xed   :  { %v1256_v59 = vpop.f32.mrf.mxu0 }
  0xee   :  { %v590_v0 = vpop.f32.mrf.mxu1  ;;  %v433_v14 = vadd.f32 %v432_v57, %v343_v6  ;;  %v745_v57 = vsel %vm743_vm5, %v744_v56, 0  ;;  %v1323_v59 = vld [vmem:[%s1648_s7] sm:$0x3f]  }
  0xef   :  { %v506_v63 = vpop.f32.mrf.mxu0  ;;  %v747_v58 = vand.u32 %v1322_v54, %v745_v57  ;;  %1318 = vmatprep.subr.msk.bf16.mxu1 %vm808_vm6, %v1323_v59  ;;  %v810_v60 = vsel %vm808_vm6, %v1323_v59, 0 }
  0xf0   :  { %v507_v2 = vadd.f32 %v506_v63, %v417_v61  ;;  %v1283_v4 = vpop.f32.mrf.mxu1  ;;  %1297 = vmatpush3.bf16.msra.mxu1 %v810_v60 }
  0xf1   :  { %v1272_v3 = vpop.f32.mrf.mxu0  ;;  %1290 = vmatprep.subr.bf16.mxu0 %v747_v58 }
  0xf2   :  { %v591_v7 = vadd.f32 %v590_v0, %v507_v2  ;;  %v596_v9 = vpop.f32.mrf.mxu1  ;;  %1291 = vmatpush3.bf16.msra.mxu0 %v747_v58 }
  0xf3   :  { %v512_v8 = vpop.f32.mrf.mxu0 }
  0xf4   :  { %v513_v10 = vadd.f32 %v512_v8, %v425_v5  ;;  %v610_v11 = vsel %vm609_vm3, %v591_v7, 0.0  ;;  %v1286_v12 = vpop.f32.mrf.mxu1 }
  0xf5   :  { %611 = vadd.xlane.f32.xlu0 %v610_v11  ;;  %v1275_v13 = vpop.f32.mrf.mxu0 }
  0xf6   :  { %v597_v15 = vadd.f32 %v596_v9, %v513_v10  ;;  %v602_v17 = vpop.f32.mrf.mxu1 }
  0xf7   :  { %v518_v16 = vpop.f32.mrf.mxu0 }
  0xf8   :  { %v519_v18 = vadd.f32 %v518_v16, %v433_v14  ;;  %v613_v19 = vsel %vm609_vm3, %v597_v15, 0.0  ;;  %v1289_v21 = vpop.f32.mrf.mxu1  ;;  %v1163_v14 = vld [vmem:[%s1649_s5] ss:$0 sm:$0xff] }
  0xf9   :  { %614 = vadd.xlane.f32.xlu0 %v613_v19  ;;  %v1278_v20 = vpop.f32.mrf.mxu0  ;;  %v1161_v16 = vld [vmem:[%s1650_s3] ss:$0 sm:$0xff] }
  0xfa   :  { %v603_v22 = vadd.f32 %v602_v17, %v519_v18  ;;  %v1164_v21 = vld [vmem:[%s1651_s6] ss:$0 sm:$0xff] }
  0xfc   :  { %v616_v23 = vsel %vm609_vm3, %v603_v22, 0.0 }
  0xfd   :  { %617 = vadd.xlane.f32.xlu0 %v616_v23  ;;  %v1162_v23 = vld [vmem:[%s1652_s4] ss:$0 sm:$0xff] }
 0x17e   :  { %v612_v25 = vpop.xlane.xlu0 %611 }
 0x17f   :  { %v629_v27 = vadd.f32 %v622_v24, %v612_v25 }
 0x181   :  { %v632_v29 = vmul.f32 0.037037037, %v629_v27 }
 0x182   :  { %v615_v31 = vpop.xlane.xlu0 %614 }
 0x183   :  { %v1525_v33 = vsub.f32 %v591_v7, %v632_v29  ;;  %v1528_v34 = vsub.f32 %v1504_v28, %v632_v29  ;;  %v630_v35 = vadd.f32 %v625_v26, %v615_v31 }
 0x185   :  { %v633_v37 = vmul.f32 0.037037037, %v630_v35  ;;  %v641_v38 = vmul.f32 %v1525_v33, %v1525_v33  ;;  %v653_v40 = vmul.f32 %v1528_v34, %v1528_v34 }
 0x186   :  { %v618_v39 = vpop.xlane.xlu0 %617 }
 0x187   :  { %v1534_v41 = vsub.f32 %v597_v15, %v633_v37  ;;  %v1537_v42 = vsub.f32 %v1511_v30, %v633_v37  ;;  %v631_v43 = vadd.f32 %v628_v36, %v618_v39  ;;  %v644_v44 = vsel %vm609_vm3, %v641_v38, 0.0 }
 0x188   :  { %645 = vadd.xlane.f32.xlu0 %v644_v44  ;;  %v656_v46 = vsel %vm619_vm2, %v653_v40, 0.0 }
 0x189   :  { %v634_v28 = vmul.f32 0.037037037, %v631_v43  ;;  %v642_v45 = vmul.f32 %v1534_v41, %v1534_v41  ;;  %v654_v30 = vmul.f32 %v1537_v42, %v1537_v42 }
 0x18b   :  { %v1543_v47 = vsub.f32 %v603_v22, %v634_v28  ;;  %v1546_v48 = vsub.f32 %v1518_v32, %v634_v28  ;;  %v647_v49 = vsel %vm609_vm3, %v642_v45, 0.0  ;;  %v659_v51 = vsel %vm619_vm2, %v654_v30, 0.0 }
 0x18c   :  { %648 = vadd.xlane.f32.xlu1 %v647_v49  ;;  %657 = vadd.xlane.f32.xlu0 %v656_v46  ;;  %v1171_v46 = vld [vmem:[%s1653_s9] ss:$0 sm:$0xff] }
 0x18d   :  { %v643_v50 = vmul.f32 %v1543_v47, %v1543_v47  ;;  %v655_v53 = vmul.f32 %v1546_v48, %v1546_v48 }
 0x18f   :  { %v650_v52 = vsel %vm609_vm3, %v643_v50, 0.0  ;;  %v662_v32 = vsel %vm619_vm2, %v655_v53, 0.0 }
 0x190   :  { %660 = vadd.xlane.f32.xlu1 %v659_v51  ;;  %651 = vadd.xlane.f32.xlu0 %v650_v52 }
 0x194   :  { %663 = vadd.xlane.f32.xlu1 %v662_v32 }
 0x211   :  { %v646_v61 = vpop.xlane.xlu0 %645 }
 0x215   :  { %v649_v62 = vpop.xlane.xlu1 %648  ;;  %v658_v63 = vpop.xlane.xlu0 %657 }
 0x216   :  { %v665_v0 = vadd.f32 %v658_v63, %v646_v61 }
 0x218   :  { %v668_v1 = vmul.f32 0.037037037, %v665_v0 }
 0x219   :  { %v661_v2 = vpop.xlane.xlu1 %660  ;;  %v652_v6 = vpop.xlane.xlu0 %651 }
 0x21a   :  { %v671_v3 = vadd.f32 1e-05, %v668_v1  ;;  %v666_v4 = vadd.f32 %v661_v2, %v649_v62 }
 0x21c   :  { %1328 = vrsqrt.f32 %v671_v3  ;;  %v669_v5 = vmul.f32 0.037037037, %v666_v4 }
 0x21d   :  { %v664_v7 = vpop.xlane.xlu1 %663 }
 0x21e   :  { %v672_v8 = vadd.f32 1e-05, %v669_v5  ;;  %v667_v9 = vadd.f32 %v664_v7, %v652_v6 }
 0x220   :  { %1330 = vrsqrt.f32 %v672_v8  ;;  %v670_v10 = vmul.f32 0.037037037, %v667_v9 }
 0x222   :  { %v673_v11 = vadd.f32 1e-05, %v670_v10 }
 0x224   :  { %1332 = vrsqrt.f32 %v673_v11 }
 0x229   :  { %v1329_v12 = vpop.eup %1328 }
 0x22a   :  { %v700_v13 = vmul.f32 %v1329_v12, %v1528_v34  ;;  %v677_v15 = vmul.f32 %v1329_v12, %v1525_v33 }
 0x22c   :  { %v710_v18 = vmul.f32 %v1163_v14, %v700_v13  ;;  %v687_v19 = vmul.f32 %v1161_v16, %v677_v15  ;;  %v1324_v13 = vld [vmem:[%s1654_s12 + $0x8] sm:$0xff]  }
 0x22d   :  { %v1331_v17 = vpop.eup %1330  ;;  %1302 = vmatprep.subr.bf16.mxu0 %v1324_v13 }
 0x22e   :  { %v701_v20 = vmul.f32 %v1331_v17, %v1537_v42  ;;  %v678_v22 = vmul.f32 %v1331_v17, %v1534_v41  ;;  %v720_v27 = vadd.f32 %v1164_v21, %v710_v18  ;;  %v697_v29 = vadd.f32 %v1162_v23, %v687_v19 }
 0x230   :  { %v711_v24 = vmul.f32 %v1163_v14, %v701_v20  ;;  %v688_v25 = vmul.f32 %v1161_v16, %v678_v22 }
 0x231   :  { %v1333_v26 = vpop.eup %1332 }
 0x232   :  { %v679_v31 = vmul.f32 %v1333_v26, %v1543_v47  ;;  %v702_v33 = vmul.f32 %v1333_v26, %v1546_v48  ;;  %v721_v34 = vadd.f32 %v1164_v21, %v711_v24  ;;  %v698_v35 = vadd.f32 %v1162_v23, %v688_v25  ;;  %v1172_v26 = vld [vmem:[%s1655_s10] ss:$0 sm:$0xff] }
 0x234   :  { %v712_v36 = vmul.f32 %v1163_v14, %v702_v33  ;;  %v727_v37 = vpack.c.bf16 %v721_v34, %v720_v27  ;;  %v689_v38 = vmul.f32 %v1161_v16, %v679_v31  ;;  %v723_v39 = vpack.c.bf16 %v698_v35, %v697_v29  ;;  %v1325_v14 = vld [vmem:[%s1654_s12] sm:$0xff]  }
 0x235   :  { %v1173_v35 = vld [vmem:[%s1656_s11] ss:$0 sm:$0xff] }
 0x236   :  { %v722_v40 = vadd.f32 %v1164_v21, %v712_v36  ;;  %1292 = vmatprep.mubr.msk.bf16.mxu0 %vm619_vm2, %v727_v37  ;;  %v699_v41 = vadd.f32 %v1162_v23, %v689_v38  ;;  %1298 = vmatprep.mubr.msk.bf16.mxu1 %vm609_vm3, %v723_v39 }
 0x238   :  { %v728_v42 = vpack.c.bf16 %v722_v40, %v722_v40  ;;  %v724_v43 = vpack.c.bf16 %v699_v41, %v699_v41 }
 0x23a   :  { %1293 = vmatmul.mubr.msk.bf16.vlgmr.msra.gmra.mxu0 %vm619_vm2, %v728_v42  ;;  %1299 = vmatmul.mubr.msk.bf16.vlgmr.msra.gmra.mxu1 %vm609_vm3, %v724_v43 }
 0x23b   :  { %1303 = vmatpush3.bf16.msra.mxu0 %v1324_v13 }
 0x23c   :  { %1304 = vmatprep.subr.bf16.mxu0 %v1325_v14 }
 0x23f   :  { %1305 = vmatpush3.bf16.msra.mxu0 %v1325_v14 }
 0x2fa   :  { %v1294_v44 = vpop.f32.mrf.mxu0  ;;  %v1300_v28 = vpop.f32.mrf.mxu1 }
 0x2fb   :  { %v855_v45 = vadd.f32 %v1300_v28, %v1294_v44  ;;  %v1174_v44 = vld [vmem:[%s1657_s13] ss:$0 sm:$0xff] }
 0x2fc   :  { %v783_v47 = vpop.f32.mrf.mxu0  ;;  %v846_v48 = vpop.f32.mrf.mxu1 }
 0x2fd   :  { %v847_v49 = vadd.f32 %v846_v48, %v783_v47  ;;  %v869_v51 = vadd.f32 %v1171_v46, %v855_v45 }
 0x2fe   :  { %v1295_v30 = vpop.f32.mrf.mxu0  ;;  %v1301_v50 = vpop.f32.mrf.mxu1 }
 0x2ff   :  { %v867_v52 = vadd.f32 %v1171_v46, %v847_v49  ;;  %v872_v58 = vmax.f32 %v869_v51, 0.0 }
 0x300   :  { %v786_v53 = vpop.f32.mrf.mxu0  ;;  %v849_v32 = vpop.f32.mrf.mxu1 }
 0x301   :  { %v850_v54 = vadd.f32 %v849_v32, %v786_v53  ;;  %v870_v55 = vmax.f32 %v867_v52, 0.0  ;;  %v882_v60 = vsel %vm875_vm7, %v872_v58, 0.0 }
 0x303   :  { %v868_v56 = vadd.f32 %v1171_v46, %v850_v54  ;;  %v876_v57 = vsel %vm875_vm7, %v870_v55, 0.0 }
 0x304   :  { %877 = vadd.xlane.f32.xlu0 %v876_v57 }
 0x305   :  { %v871_v59 = vmax.f32 %v868_v56, 0.0 }
 0x307   :  { %v879_v61 = vsel %vm875_vm7, %v871_v59, 0.0 }
 0x308   :  { %883 = vadd.xlane.f32.xlu0 %v882_v60  ;;  %880 = vadd.xlane.f32.xlu1 %v879_v61 }
 0x38d   :  { %v878_v62 = vpop.xlane.xlu0 %877 }
 0x38e   :  { %v886_v63 = vmul.f32 0.03125, %v878_v62 }
 0x390   :  { %v889_v0 = vsub.f32 %v870_v55, %v886_v63 }
 0x391   :  { %v884_v1 = vpop.xlane.xlu0 %883  ;;  %v881_v2 = vpop.xlane.xlu1 %880 }
 0x392   :  { %v888_v3 = vmul.f32 0.03125, %v884_v1  ;;  %v887_v4 = vmul.f32 0.03125, %v881_v2  ;;  %v892_v5 = vmul.f32 %v889_v0, %v889_v0 }
 0x394   :  { %v891_v6 = vsub.f32 %v872_v58, %v888_v3  ;;  %v890_v7 = vsub.f32 %v871_v59, %v887_v4  ;;  %v895_v8 = vsel %vm875_vm7, %v892_v5, 0.0  ;;  %v1326_v5 = vld [vmem:[%s1658_s16 + $0x8] sm:$0xff]  }
 0x395   :  { %896 = vadd.xlane.f32.xlu1 %v895_v8  ;;  %1310 = vmatprep.subr.bf16.mxu1 %v1326_v5 }
 0x396   :  { %v894_v9 = vmul.f32 %v891_v6, %v891_v6  ;;  %v893_v10 = vmul.f32 %v890_v7, %v890_v7  ;;  %1311 = vmatpush3.bf16.msra.mxu1 %v1326_v5 }
 0x398   :  { %v901_v11 = vsel %vm875_vm7, %v894_v9, 0.0  ;;  %v898_v12 = vsel %vm875_vm7, %v893_v10, 0.0 }
 0x399   :  { %902 = vadd.xlane.f32.xlu1 %v901_v11  ;;  %899 = vadd.xlane.f32.xlu0 %v898_v12 }
 0x41e   :  { %v897_v15 = vpop.xlane.xlu1 %896 }
 0x41f   :  { %v904_v16 = vmul.f32 0.03125, %v897_v15 }
 0x421   :  { %v907_v17 = vadd.f32 1e-05, %v904_v16 }
 0x422   :  { %v900_v18 = vpop.xlane.xlu0 %899  ;;  %v903_v19 = vpop.xlane.xlu1 %902 }
 0x423   :  { %1334 = vrsqrt.f32 %v907_v17  ;;  %v905_v20 = vmul.f32 0.03125, %v900_v18  ;;  %v906_v21 = vmul.f32 0.03125, %v903_v19  ;;  %v1179_v18 = vld [vmem:[%s1659_s14] ss:$0 sm:$0xff] }
 0x425   :  { %v908_v22 = vadd.f32 1e-05, %v905_v20  ;;  %v909_v23 = vadd.f32 1e-05, %v906_v21 }
 0x427   :  { %1336 = vrsqrt.f32 %v908_v22 }
 0x428   :  { %1338 = vrsqrt.f32 %v909_v23 }
 0x430   :  { %v1335_v24 = vpop.eup %1334 }
 0x431   :  { %v913_v25 = vmul.f32 %v1335_v24, %v889_v0  ;;  %v1180_v24 = vld [vmem:[%s1660_s15] ss:$0 sm:$0xff] }
 0x433   :  { %v922_v33 = vmul.f32 %v1172_v26, %v913_v25 }
 0x434   :  { %v1337_v27 = vpop.eup %1336 }
 0x435   :  { %v1339_v29 = vpop.eup %1338  ;;  %v914_v31 = vmul.f32 %v1337_v27, %v890_v7  ;;  %v931_v38 = vadd.f32 %v1173_v35, %v922_v33 }
 0x436   :  { %v915_v34 = vmul.f32 %v1339_v29, %v891_v6  ;;  %v1327_v6 = vld [vmem:[%s1658_s16] sm:$0xff]  }
 0x437   :  { %v923_v36 = vmul.f32 %v1172_v26, %v914_v31  ;;  %1312 = vmatprep.subr.bf16.mxu1 %v1327_v6 }
 0x438   :  { %v924_v37 = vmul.f32 %v1172_v26, %v915_v34  ;;  %1313 = vmatpush3.bf16.msra.mxu1 %v1327_v6 }
 0x439   :  { %v932_v39 = vadd.f32 %v1173_v35, %v923_v36 }
 0x43a   :  { %v933_v40 = vadd.f32 %v1173_v35, %v924_v37  ;;  %v1181_v35 = vld [vmem:[%s1661_s17] ss:$0 sm:$0xff] }
 0x43b   :  { %v934_v41 = vpack.c.bf16 %v932_v39, %v931_v38 }
 0x43c   :  { %v935_v42 = vpack.c.bf16 %v933_v40, %v933_v40 }
 0x43d   :  { %1306 = vmatprep.mubr.msk.bf16.mxu0 %vm875_vm7, %v934_v41 }
 0x43e   :  { %1307 = vmatmul.mubr.msk.bf16.vlgmr.msra.gmra.mxu0 %vm875_vm7, %v935_v42 }
 0x4fe   :  { %v1308_v43 = vpop.f32.mrf.mxu0 }
 0x4ff   :  { %v1008_v45 = vadd.f32 %v1308_v43, %v1174_v44 }
 0x500   :  { %v999_v28 = vpop.f32.mrf.mxu0 }
 0x501   :  { %v1000_v46 = vadd.f32 %v1174_v44, %v999_v28  ;;  %v1015_v30 = vmax.f32 %v1008_v45, 0.0 }
 0x502   :  { %v1309_v47 = vpop.f32.mrf.mxu0 }
 0x503   :  { %v1013_v48 = vmax.f32 %v1000_v46, 0.0  ;;  %v1024_v32 = vsel %vm875_vm7, %v1015_v30, 0.0 }
 0x504   :  { %v1002_v49 = vpop.f32.mrf.mxu0 }
 0x505   :  { %v1003_v50 = vadd.f32 %v1174_v44, %v1002_v49  ;;  %v1018_v51 = vsel %vm875_vm7, %v1013_v48, 0.0 }
 0x506   :  { %1019 = vadd.xlane.f32.xlu0 %v1018_v51 }
 0x507   :  { %v1014_v52 = vmax.f32 %v1003_v50, 0.0 }
 0x509   :  { %v1021_v53 = vsel %vm875_vm7, %v1014_v52, 0.0 }
 0x50a   :  { %1022 = vadd.xlane.f32.xlu1 %v1021_v53  ;;  %1025 = vadd.xlane.f32.xlu0 %v1024_v32 }
 0x58f   :  { %v1020_v54 = vpop.xlane.xlu0 %1019 }
 0x590   :  { %v1027_v55 = vmul.f32 0.03125, %v1020_v54 }
 0x592   :  { %v1030_v56 = vsub.f32 %v1013_v48, %v1027_v55 }
 0x593   :  { %v1023_v57 = vpop.xlane.xlu1 %1022  ;;  %v1026_v58 = vpop.xlane.xlu0 %1025 }
 0x594   :  { %v1028_v59 = vmul.f32 0.03125, %v1023_v57  ;;  %v1029_v60 = vmul.f32 0.03125, %v1026_v58  ;;  %v1033_v61 = vmul.f32 %v1030_v56, %v1030_v56 }
 0x596   :  { %v1031_v62 = vsub.f32 %v1014_v52, %v1028_v59  ;;  %v1032_v63 = vsub.f32 %v1015_v30, %v1029_v60  ;;  %v1036_v0 = vsel %vm875_vm7, %v1033_v61, 0.0 }
 0x597   :  { %1037 = vadd.xlane.f32.xlu1 %v1036_v0 }
 0x598   :  { %v1034_v1 = vmul.f32 %v1031_v62, %v1031_v62  ;;  %v1035_v2 = vmul.f32 %v1032_v63, %v1032_v63 }
 0x59a   :  { %v1039_v3 = vsel %vm875_vm7, %v1034_v1, 0.0  ;;  %v1042_v4 = vsel %vm875_vm7, %v1035_v2, 0.0 }
 0x59b   :  { %1040 = vadd.xlane.f32.xlu0 %v1039_v3  ;;  %1043 = vadd.xlane.f32.xlu1 %v1042_v4 }
 0x620   :  { %v1038_v7 = vpop.xlane.xlu1 %1037 }
 0x621   :  { %v1045_v8 = vmul.f32 0.03125, %v1038_v7 }
 0x623   :  { %v1048_v9 = vadd.f32 1e-05, %v1045_v8 }
 0x624   :  { %v1044_v10 = vpop.xlane.xlu1 %1043  ;;  %v1041_v11 = vpop.xlane.xlu0 %1040 }
 0x625   :  { %1340 = vrsqrt.f32 %v1048_v9  ;;  %v1047_v12 = vmul.f32 0.03125, %v1044_v10  ;;  %v1046_v13 = vmul.f32 0.03125, %v1041_v11 }
 0x627   :  { %v1050_v14 = vadd.f32 1e-05, %v1047_v12  ;;  %v1049_v15 = vadd.f32 1e-05, %v1046_v13 }
 0x629   :  { %1342 = vrsqrt.f32 %v1050_v14 }
 0x62a   :  { %1344 = vrsqrt.f32 %v1049_v15 }
 0x632   :  { %v1341_v16 = vpop.eup %1340 }
 0x633   :  { %v1054_v17 = vmul.f32 %v1341_v16, %v1030_v56 }
 0x635   :  { %v1063_v23 = vmul.f32 %v1179_v18, %v1054_v17 }
 0x636   :  { %v1343_v19 = vpop.eup %1342 }
 0x637   :  { %v1345_v20 = vpop.eup %1344  ;;  %v1056_v21 = vmul.f32 %v1343_v19, %v1032_v63  ;;  %v1072_v29 = vadd.f32 %v1180_v24, %v1063_v23 }
 0x638   :  { %v1055_v22 = vmul.f32 %v1345_v20, %v1031_v62 }
 0x639   :  { %v1065_v25 = vmul.f32 %v1179_v18, %v1056_v21 }
 0x63a   :  { %v1064_v26 = vmul.f32 %v1179_v18, %v1055_v22 }
 0x63b   :  { %v1074_v27 = vadd.f32 %v1180_v24, %v1065_v25 }
 0x63c   :  { %v1073_v31 = vadd.f32 %v1180_v24, %v1064_v26 }
 0x63d   :  { %v1076_v33 = vpack.c.bf16 %v1074_v27, %v1074_v27 }
 0x63e   :  { %v1075_v34 = vpack.c.bf16 %v1073_v31, %v1072_v29 }
 0x640   :  { %1314 = vmatprep.mubr.msk.bf16.mxu1 %vm875_vm7, %v1075_v34 }
 0x641   :  { %1315 = vmatmul.mubr.msk.bf16.vlgmr.msra.gmra.mxu1 %vm875_vm7, %v1076_v33 }
 0x701   :  { %v1316_v36 = vpop.f32.mrf.mxu1 }
 0x702   :  { %v1149_v37 = vadd.f32 %v1316_v36, %v1181_v35 }
 0x703   :  { %v1140_v38 = vpop.f32.mrf.mxu1 }
 0x704   :  { %1156 = vst [vmem:[%s1662_s18 + $0x10] sm:$0xff] %v1149_v37  ;;  %v1141_v39 = vadd.f32 %v1181_v35, %v1140_v38 }
 0x705   :  { %v1317_v40 = vpop.f32.mrf.mxu1 }
 0x706   :  { %1154 = vst [vmem:[%s1662_s18] sm:$0xff] %v1141_v39 }
 0x707   :  { %v1143_v41 = vpop.f32.mrf.mxu1 }
 0x708   :  { %v1144_v42 = vadd.f32 %v1181_v35, %v1143_v41 }
 0x70a   :  { %1155 = vst [vmem:[%s1662_s18 + $0x8] sm:$0xff] %v1144_v42 }

</bundles_post_ra>
